<compile_context>
chip_gen: v7x
topology: tpu7x:2x2x1
jax: 0.10.0
libtpu: 0.0.40
codegen_flags: <defaults>
</compile_context>

<pallas_src>
import functools

import jax
import jax.numpy as jnp
from jax import lax
from jax.experimental import pallas as pl
from jax.experimental.pallas import tpu as pltpu


def _style_loss_kernel(scalars_ref, feat_ref, tw_ref, loss_ref, acc_ref,
                       *, K, inv_norm, inv_mm):
    """Grid axis 0 = K (reduction) tiles.

    scalars_ref: (2,)    f32 SMEM  -> [sum_s w_s, sum_s w_s * mean(T_s^2)]
    feat_ref:    (M, tk) VMEM feature K-tile (native activation dtype)
    tw_ref:      (M, M)  f32 VMEM weighted target  sum_s w_s * T_s
    loss_ref:    (1,)    f32 SMEM  scalar loss output
    acc_ref:     (M, M)  f32 VMEM un-normalized gram accumulator
    """
    k = pl.program_id(0)
    tk = feat_ref.shape[1]

    @pl.when(k == 0)
    def _():
        acc_ref[...] = jnp.zeros_like(acc_ref)

    f = feat_ref[...]
    if K % tk != 0:  # static: only emit masking code when a ragged tail exists
        # Mask lanes past K on the last tile (OOB block region is undefined).
        col = lax.broadcasted_iota(jnp.int32, f.shape, 1)
        rem = K - k * tk                     # >= tk for all but the last tile
        f = jnp.where(col < rem, f, jnp.zeros_like(f))

    # Contract the K axis of the tile against itself directly on the MXU
    # (no transposed copy of the feature tile), accumulating in f32.
    acc_ref[...] += lax.dot_general(
        f, f,
        dimension_numbers=(((1,), (1,)), ((), ())),
        preferred_element_type=jnp.float32,
    )

    @pl.when(k == pl.num_programs(0) - 1)
    def _():
        g = acc_ref[...]                      # un-normalized gram
        c1 = scalars_ref[0] * (inv_norm * inv_norm)   # W / norm^2
        c2 = 2.0 * inv_norm
        # Fused single-pass epilogue:  W*mean(G^2) - 2*mean(G*Tw) + c0
        # NOTE: near convergence (G ~= targets) this expanded quadratic can
        # lose a few mantissa bits to cancellation in f32; acceptable for
        # style loss in practice.
        s = jnp.sum(g * (c1 * g - c2 * tw_ref[...]))
        loss_ref[0] = s * inv_mm + scalars_ref[1]


def style_loss_forward(x, targets, weights, *, tk=None, feat_buffers=2):
    """JAX/Pallas equivalent of StyleLoss.forward.

    Args:
      x:       (a, b, c, d) NCHW activations (f32 or bf16 -- streamed as-is).
      targets: (num_styles, a*b, a*b) precomputed style gram matrices.
      weights: (num_styles,) per-style weights.
      tk:      optional K-tile width override.
      feat_buffers: pipeline depth for the feature stream (sweep 2 vs 3).

    Returns:
      (x, loss): x unchanged (like the PyTorch module), loss scalar f32.
    """
    a, b, c, d = x.shape
    M = a * b
    K = c * d
    inv_norm = 1.0 / float(a * b * c * d)
    inv_mm = 1.0 / float(M * M)

    # Glue reshape only (torch .view): no astype / pad copies of the feature
    # map in HBM -- the kernel streams x in its native dtype.
    features = x.reshape(M, K)
    itemsize = jnp.dtype(features.dtype).itemsize

    # ---- K-tile selection --------------------------------------------------
    # Resident VMEM = feat_buffers feature buffers + single-buffered tw + acc.
    # Target <= ~40 MiB so it fits v7x's 64 MiB physical VMEM; v5e/v6e
    # (128 MiB) get wide, well-amortized tiles.
    if tk is None:
        budget = 40 * 1024 * 1024
        fixed = 2 * M * M * 4                          # tw (x1) + acc scratch
        per_buf_cap = 16 * 1024 * 1024
        avail = max(budget - fixed, feat_buffers * M * 128 * itemsize)
        tk_bytes = min(per_buf_cap, avail // feat_buffers)
        tk = max(128, (tk_bytes // (M * itemsize)) // 128 * 128)
    tk = int(tk)
    if K <= 128:
        tk = K                                         # single full-width block
    else:
        tk = max(128, min((tk // 128) * 128, (K // 128) * 128))
    num_k = pl.cdiv(K, tk)                             # ragged tail masked in-kernel

    weights = weights.astype(jnp.float32)
    targets = targets.astype(jnp.float32)

    # Collapsed multi-style MSE (tiny; hoist to module init in a real training
    # loop since targets/weights are static across steps):
    #   sum_s w_s*mean((G-T_s)^2) = W*mean(G^2) - 2*mean(G*Tw) + c0
    w_sum = jnp.sum(weights)
    tw = jnp.einsum("s,sij->ij", weights, targets)
    c0 = jnp.sum(weights * jnp.mean(targets * targets, axis=(1, 2)))
    scalars = jnp.stack([w_sum, c0]).astype(jnp.float32)

    # Explicit scoped-VMEM limit: default (16 MiB v5e / 32 MiB v6e,v7x) can
    # clip the allocation or silently shrink pipelining.
    vmem_need = feat_buffers * M * tk * itemsize + 2 * M * M * 4 + (4 << 20)
    vmem_limit = int(min(max(vmem_need, 32 << 20), 100 << 20))

    kernel = functools.partial(_style_loss_kernel, K=K,
                               inv_norm=inv_norm, inv_mm=inv_mm)

    loss = pl.pallas_call(
        kernel,
        out_shape=jax.ShapeDtypeStruct((1,), jnp.float32),
        grid_spec=pltpu.PrefetchScalarGridSpec(
            num_scalar_prefetch=0,
            grid=(num_k,),
            in_specs=[
                pl.BlockSpec(memory_space=pltpu.MemorySpace.SMEM),   # [W, c0]
                pl.BlockSpec((M, tk), lambda k: (0, k),
                             pipeline_mode=pl.Buffered(feat_buffers)),
                pl.BlockSpec((M, M), lambda k: (0, 0),
                             pipeline_mode=pl.Buffered(1)),          # read once
            ],
            out_specs=pl.BlockSpec(memory_space=pltpu.MemorySpace.SMEM),
            scratch_shapes=[pltpu.VMEM((M, M), jnp.float32)],
        ),
        compiler_params=pltpu.CompilerParams(
            dimension_semantics=("arbitrary",),
            vmem_limit_bytes=vmem_limit,
        ),
        cost_estimate=pl.CostEstimate(
            flops=2 * M * M * K,
            bytes_accessed=M * K * itemsize + M * M * 4 + 12,
            transcendentals=0,
        ),
    )(scalars, features, tw)

    return x, loss[0]


def _reference(x, targets, weights):
    a, b, c, d = x.shape
    f = x.reshape(a * b, c * d).astype(jnp.float32)
    g = (f @ f.T) / (a * b * c * d)
    losses = jnp.mean((g[None] - targets) ** 2, axis=(1, 2))
    return jnp.sum(weights * losses)


if __name__ == "__main__":
    key = jax.random.PRNGKey(0)
    k_x, k_t, k_w, k_x2 = jax.random.split(key, 4)

    a, b, c, d = 2, 4, 16, 16          # NCHW, small shapes
    num_styles = 3
    M = a * b

    x = jax.random.normal(k_x, (a, b, c, d), dtype=jnp.float32)
    # Deterministic synthetic "target" gram matrices and weights (no checkpoint).
    targets = jax.random.normal(k_t, (num_styles, M, M), dtype=jnp.float32) * 0.1
    weights = jax.random.uniform(k_w, (num_styles,), dtype=jnp.float32)

    # Default tiling (single K step at these tiny shapes).
    x_out, loss = style_loss_forward(x, targets, weights)
    jax.block_until_ready((x_out, loss))

    # Force tk=128 so the multi-step K accumulation path is exercised too.
    _, loss_tiled = style_loss_forward(x, targets, weights, tk=128)
    jax.block_until_ready(loss_tiled)

    # Ragged K (= 16*18 = 288): exercises the in-kernel tail masking path.
    x2 = jax.random.normal(k_x2, (a, b, 16, 18), dtype=jnp.float32)
    _, loss_ragged = style_loss_forward(x2, targets, weights)
    jax.block_until_ready(loss_ragged)

    # Silent correctness checks against a pure-JAX reference.  Tolerance is
    # relaxed because TPU matmuls at default precision use bf16 MXU passes
    # (both kernel and reference), with slightly different rounding paths.
    ref = _reference(x, targets, weights)
    ref2 = _reference(x2, targets, weights)
    assert jnp.allclose(loss, ref, rtol=5e-3, atol=1e-5), (loss, ref)
    assert jnp.allclose(loss_tiled, ref, rtol=5e-3, atol=1e-5), (loss_tiled, ref)
    assert jnp.allclose(loss_ragged, ref2, rtol=5e-3, atol=1e-5), (loss_ragged, ref2)
    assert jnp.array_equal(x_out, x)

    print("KERNEL_OK")
</pallas_src>

<mosaic_0001>
module attributes {stable_mosaic.version = 11 : i64} {
  func.func @_style_loss_kernel(%arg0: i32, %arg1: memref<2xf32, #tpu.memory_space<smem>>, %arg2: memref<8x256xf32, #tpu.memory_space<vmem>>, %arg3: memref<8x8xf32, #tpu.memory_space<vmem>>, %arg4: memref<1xf32, #tpu.memory_space<smem>>, %arg5: memref<8x8xf32, #tpu.memory_space<vmem>>) attributes {dimension_semantics = [#tpu.dimension_semantics<arbitrary>], iteration_bounds = array<i64: 1>, scalar_prefetch = 0 : i64, scratch_operands = 1 : i64, tpu.core_type = #tpu.core_type<tc>, window_params = [{transform_indices = @transform_0, window_bounds = array<i64: 2>}, {pipeline_mode = #tpu.pipeline_mode<double_buffered>, transform_indices = @transform_1, window_bounds = array<i64: 8, 256>}, {pipeline_mode = #tpu.pipeline_mode<synchronous>, transform_indices = @transform_2, window_bounds = array<i64: 8, 8>}, {transform_indices = @transform_3, window_bounds = array<i64: 1>}]} {
    %c0_i32 = arith.constant 0 : i32
    %0 = arith.cmpi eq, %arg0, %c0_i32 : i32
    %1 = arith.extui %0 : i1 to i32
    %c0_i32_0 = arith.constant 0 : i32
    %2 = arith.cmpi ne, %1, %c0_i32_0 : i32
    scf.if %2 {
      %cst_8 = arith.constant 0.000000e+00 : f32
      %11 = vector.broadcast %cst_8 : f32 to vector<8x8xf32>
      %c0_9 = arith.constant 0 : index
      %c0_10 = arith.constant 0 : index
      %12 = vector.load %arg5[%c0_9, %c0_10] : memref<8x8xf32, #tpu.memory_space<vmem>>, vector<8x8xf32>
      tpu.vector_store %arg5[%c0_9, %c0_10], %11 {strides = array<i32>} : memref<8x8xf32, #tpu.memory_space<vmem>>, vector<8x8xf32>,
    } else {
    }
    %c0 = arith.constant 0 : index
    %c0_1 = arith.constant 0 : index
    %3 = vector.load %arg2[%c0, %c0_1] : memref<8x256xf32, #tpu.memory_space<vmem>>, vector<8x256xf32>
    %c0_2 = arith.constant 0 : index
    %c0_3 = arith.constant 0 : index
    %4 = vector.load %arg5[%c0_2, %c0_3] : memref<8x8xf32, #tpu.memory_space<vmem>>, vector<8x8xf32>
    %cst = arith.constant dense<0.000000e+00> : vector<8x8xf32>
    %5 = tpu.matmul %3, %3, %cst {dimension_numbers = #tpu.dot_dimension_numbers<[1], [1], [0], [0], [0, 0, 1, 0], [], []>} : vector<8x256xf32>, vector<8x256xf32>, vector<8x8xf32> -> vector<8x8xf32>
    %6 = arith.addf %4, %5 : vector<8x8xf32>
    %c0_4 = arith.constant 0 : index
    %c0_5 = arith.constant 0 : index
    %7 = vector.load %arg5[%c0_4, %c0_5] : memref<8x8xf32, #tpu.memory_space<vmem>>, vector<8x8xf32>
    tpu.vector_store %arg5[%c0_4, %c0_5], %6 {strides = array<i32>} : memref<8x8xf32, #tpu.memory_space<vmem>>, vector<8x8xf32>,
    %c0_i32_6 = arith.constant 0 : i32
    %8 = arith.cmpi eq, %arg0, %c0_i32_6 : i32
    %9 = arith.extui %8 : i1 to i32
    %c0_i32_7 = arith.constant 0 : i32
    %10 = arith.cmpi ne, %9, %c0_i32_7 : i32
    scf.if %10 {
      %c0_8 = arith.constant 0 : index
      %c0_9 = arith.constant 0 : index
      %11 = vector.load %arg5[%c0_8, %c0_9] : memref<8x8xf32, #tpu.memory_space<vmem>>, vector<8x8xf32>
      %c0_10 = arith.constant 0 : index
      %12 = memref.load %arg1[%c0_10] : memref<2xf32, #tpu.memory_space<smem>>
      %cst_11 = arith.constant 2.38418579E-7 : f32
      %13 = arith.mulf %12, %cst_11 : f32
      %14 = vector.broadcast %13 : f32 to vector<8x8xf32>
      %15 = arith.mulf %14, %11 : vector<8x8xf32>
      %c0_12 = arith.constant 0 : index
      %c0_13 = arith.constant 0 : index
      %16 = vector.load %arg3[%c0_12, %c0_13] : memref<8x8xf32, #tpu.memory_space<vmem>>, vector<8x8xf32>
      %cst_14 = arith.constant 9.765625E-4 : f32
      %17 = vector.broadcast %cst_14 : f32 to vector<8x8xf32>
      %18 = arith.mulf %17, %16 : vector<8x8xf32>
      %19 = arith.subf %15, %18 : vector<8x8xf32>
      %20 = arith.mulf %11, %19 : vector<8x8xf32>
      %21 = vector.shape_cast %20 : vector<8x8xf32> to vector<1x8x8xf32>
      %cst_15 = arith.constant dense<0.000000e+00> : vector<1xf32>
      %22 = vector.multi_reduction <add>, %21, %cst_15 [1, 2] : vector<1x8x8xf32> to vector<1xf32>
      %23 = vector.shape_cast %22 : vector<1xf32> to vector<1x1x1xf32>
      %24 = vector.extract %23[0, 0, 0] : f32 from vector<1x1x1xf32>
      %cst_16 = arith.constant 1.562500e-02 : f32
      %25 = arith.mulf %24, %cst_16 : f32
      %c1 = arith.constant 1 : index
      %26 = memref.load %arg1[%c1] : memref<2xf32, #tpu.memory_space<smem>>
      %27 = arith.addf %25, %26 : f32
      %c0_17 = arith.constant 0 : index
      %28 = memref.load %arg4[%c0_17] : memref<1xf32, #tpu.memory_space<smem>>
      memref.store %27, %arg4[%c0_17] : memref<1xf32, #tpu.memory_space<smem>>
    } else {
    }
    return
  }
  func.func @transform_0(%arg0: i32) -> i32 {
    %c0_i32 = arith.constant 0 : i32
    %c0_i32_0 = arith.constant 0 : i32
    return %c0_i32 : i32
  }
  func.func @transform_1(%arg0: i32) -> (i32, i32) {
    %c0_i32 = arith.constant 0 : i32
    %c0_i32_0 = arith.constant 0 : i32
    return %c0_i32, %arg0 : i32, i32
  }
  func.func @transform_2(%arg0: i32) -> (i32, i32) {
    %c0_i32 = arith.constant 0 : i32
    %c0_i32_0 = arith.constant 0 : i32
    %c0_i32_1 = arith.constant 0 : i32
    return %c0_i32, %c0_i32_0 : i32, i32
  }
  func.func @transform_3(%arg0: i32) -> i32 {
    %c0_i32 = arith.constant 0 : i32
    %c0_i32_0 = arith.constant 0 : i32
    return %c0_i32 : i32
  }
}

</mosaic_0001>

<bundles_post_ra>
// kernel: tpu_custom_call.1
= control target key start
LH: loop header
LB: loop body
LE: loop exit
PB: predicated region body
PF: predicated region fallthrough
CT: control target
= control target key end

     0   :  { %8 = vsyncpa [#allocation5], 0  ;;  %s331_s0 = inlined_call_operand.hbm [shape: f32[2], index: 0, kind: input, shape index: {}]   ;;  %s332_s1 = inlined_call_operand.hbm [shape: f32[8,256], index: 1, kind: input, shape index: {}]   ;;  %s333_s2 = inlined_call_operand.hbm [shape: f32[8,8], index: 2, kind: input, shape index: {}]   ;;  %s334_s3 = inlined_call_operand.hbm [shape: f32[1], index: 3, kind: output, shape index: {}]  }
   0x1   :  { %9 = vsyncpa [#allocation4], 0 }
   0x2   :  { %10 = vsyncpa [#allocation9], 0 }
   0x3   :  { %11 = vsyncpa [#allocation6], 0  ;;  %s183_s14 = scalar_lea.hbm %s331_s0, 16 }
   0x4   :  { %p184_p0 = scmp.ne.s32.totalorder %s331_s0, %s183_s14  ;;  %p187_p1 = scmp.lt.u32.totalorder %s183_s14, %s331_s0 }
   0x6   :  { %p189_p2 = pnand %p187_p1, %p184_p0 }
   0x8   :  { %192 = shalt.err (!%p189_p2)
}
   0x9   :  { %s255_s19 = smov [#allocation3]   ;;  %s256_s22 = smov [#allocation7]  }
   0xa   :  { %19 = dma.hbm_to_smem %s331_s0, 16, %s255_s19, [#allocation5]  }
   0xb   :  { %s26_s23 = sshll.u32 %s256_s22, 4  ;;  %s257_s24 = smov [#allocation8]   ;;  %s27_s23 = int_to_ptr.vmem [resolvable:$true] %s26_s23 }
   0xc   :  { %s36_s25 = sshll.u32 %s257_s24, 4  ;;  %s193_s28 = scalar_lea.hbm %s332_s1, 256  ;;  %s37_s25 = int_to_ptr.vmem [resolvable:$true] %s36_s25 }
   0xd   :  { %p194_p3 = scmp.ne.s32.totalorder %s332_s1, %s193_s28  ;;  %p197_p4 = scmp.lt.u32.totalorder %s193_s28, %s332_s1 }
   0xf   :  { %p199_p5 = pnand %p197_p4, %p194_p3 }
  0x11   :  { %202 = shalt.err (!%p199_p5)
}
  0x12   :  { %s203_s0 = scalar_lea.vmem %s27_s23, 256  ;;  %p208_p7 = scmp.lt.s32.totalorder %s27_s23, %s27_s23 }
  0x13   :  { %p204_p6 = scmp.ne.s32.totalorder %s27_s23, %s203_s0  ;;  %p209_p8 = scmp.lt.s32.totalorder %s203_s0, %s203_s0 }
  0x15   :  { %p210_p9 = por %p209_p8, %p208_p7 }
  0x17   :  { %p211_p10 = pnand %p210_p9, %p204_p6 }
  0x19   :  { %214 = shalt.err (!%p211_p10)
}
  0x1a   :  { %29 = dma.hbm_to_vmem [thread:$0]  %s332_s1, 256, %s27_s23, [#allocation4]  }
  0x1b   :  { %s215_s10 = scalar_lea.hbm %s333_s2, 128 }
  0x1c   :  { %p216_p11 = scmp.ne.s32.totalorder %s333_s2, %s215_s10  ;;  %p219_p12 = scmp.lt.u32.totalorder %s215_s10, %s333_s2 }
  0x1e   :  { %p221_p13 = pnand %p219_p12, %p216_p11 }
  0x20   :  { %224 = shalt.err (!%p221_p13)
}
  0x21   :  { %s225_s15 = scalar_lea.vmem %s37_s25, 128  ;;  %p230_p1 = scmp.lt.s32.totalorder %s37_s25, %s37_s25 }
  0x22   :  { %p226_p0 = scmp.ne.s32.totalorder %s37_s25, %s225_s15  ;;  %p231_p2 = scmp.lt.s32.totalorder %s225_s15, %s225_s15 }
  0x24   :  { %p232_p3 = por %p231_p2, %p230_p1 }
  0x26   :  { %p233_p4 = pnand %p232_p3, %p226_p0 }
  0x28   :  { %236 = shalt.err (!%p233_p4)
}
  0x29   :  { %39 = dma.hbm_to_vmem [thread:$0]  %s333_s2, 128, %s37_s25, [#allocation9]  }
  0x2a   :  { %247 = dma.done.wait [#allocation5], 16  }
  0x2b   :  { %248 = vsyncadd [#allocation5], 4294967280 }
  0x2c   :  { %249 = dma.done.wait [#allocation4], 256  }
  0x2d   :  { %250 = vsyncadd [#allocation4], 4294967040 }
  0x2e   :  { %251 = dma.done.wait [#allocation9], 128  }
  0x2f   :  { %252 = vsyncadd [#allocation9], 4294967168 }
  0x30   :  { %49 = sfence }
  0x31   :  { %v57_v0 = vld [vmem:[#allocation7 + $0x8] sm:$0xff]  ;;  %v56_v1 = vld [vmem:[#allocation7] sm:$0xff]  ;;  %vm54_vm0 = vcmask 64512   ;;  %v258_v2 = vmov 0.0   ;;  %s136_s17 = sld [smem:[#allocation3]]  ;;  %v140_v7 = vld [vmem:[#allocation8] sm:$0xff] }
  0x32   :  { %59 = vmatprep.subr.mxu0 %v57_v0  ;;  %123 = vmatprep.mubr.f32.mxu0 %v57_v0  ;;  %55 = vst.msk [vmem:[#allocation2] sm:$0xff] %vm54_vm0, %v258_v2  ;;  %v141_v9 = vmul.f32 0.0009765625, %v140_v7  ;;  %s175_s18 = sld [smem:[#allocation3 + $0x1]]  ;;  %s237_s24 = scalar_lea.hbm %s334_s3, 16 }
  0x33   :  { %60 = vmatpush1.xpose.msra.mxu0 %v56_v1  ;;  %p238_p5 = scmp.ne.s32.totalorder %s334_s3, %s237_s24  ;;  %p241_p6 = scmp.lt.u32.totalorder %s237_s24, %s334_s3 }
  0x35   :  { %p243_p7 = pnand %p241_p6, %p238_p5 }
  0x36   :  { %124 = vmatmul.mubr.f32.vlgmr.msra.gmra.mrb[0].mxu0 %v56_v1 }
  0x37   :  { %s137_s2 = smul.f32 2.3841858e-07, %s136_s17 }
  0x39   :  { %v58_v3 = vld [vmem:[#allocation2] sm:$0xff]  ;;  %v138_v8 = vstv %s137_s2 }
 0x109   :  { %v125_v4 = vpop.f32.mrb[0].mxu0 }
 0x10a   :  { %v129_v5 = vadd.f32 %v125_v4, %v58_v3  ;;  %v127_v6 = vpop.f32.mrb[1].mxu0 }
 0x10c   :  { %131 = vst.msk [vmem:[#allocation2] sm:$0xff] %vm54_vm0, %v129_v5 }
 0x113   :  { %v135_v10 = vld [vmem:[#allocation2] sm:$0xff] }
 0x114   :  { %v139_v11 = vmul.f32 %v138_v8, %v135_v10 }
 0x116   :  { %v142_v12 = vsub.f32 %v139_v11, %v141_v9 }
 0x118   :  { %v143_v13 = vmul.f32 %v142_v12, %v135_v10 }
 0x11a   :  { %v144_v14 = vsel %vm54_vm0, %v143_v13, 0.0 }
 0x11b   :  { %145 = vadd.xlane.f32.xlu0 %v144_v14 }
 0x1a8   :  { %v146_v15 = vpop.xlane.xlu0 %145 }
 0x1a9   :  { %v147_v16 = vrot.slane %v146_v15, 4 }
 0x1ab   :  { %v148_v17 = vadd.f32 %v147_v16, %v146_v15 }
 0x1ad   :  { %v149_v18 = vrot.slane %v148_v17, 2 }
 0x1af   :  { %v150_v19 = vadd.f32 %v149_v18, %v148_v17 }
 0x1b1   :  { %v151_v20 = vrot.slane %v150_v19, 1 }
 0x1b3   :  { %v152_v21 = vadd.f32 %v151_v20, %v150_v19 }
 0x1b5   :  { %176 = vpush %v152_v21 }
 0x1e6   :  { %s177_s19 = spop %176 }
 0x1e7   :  { %s154_s20 = smul.f32 0.015625, %s177_s19 }
 0x1e9   :  { %s156_s21 = sadd.f32 %s175_s18, %s154_s20 }
 0x1eb   :  { %158 = sst [smem:[#allocation10]] %s156_s21 }
 0x1ec   :  { %246 = shalt.err (!%p243_p7)
}
 0x1ed   :  { %s259_s29 = smov [#allocation10]  }
 0x1ee   :  { %166 = dma.smem_to_hbm %s259_s29, 16, %s334_s3, [#allocation6]  }
 0x1ef   :  { %253 = dma.done.wait [#allocation6], 16  }
 0x1f0   :  { %254 = vsyncadd [#allocation6], 4294967280 }
 0x1f1   :  { %170 = sfence }
 0x1f2   :  { %171 = vsyncpa [#allocation4], 1 }
 0x1f3   :  { %172 = vsyncpa [#allocation9], 1 }
 0x1f4   :  { %173 = vsyncpa [#allocation5], 1 }
 0x1f5   :  { %174 = vsyncpa [#allocation6], 1 }

</bundles_post_ra>
